<compile_context>
chip_gen: v7x
topology: tpu7x:2x2x1
jax: 0.10.0
libtpu: 0.0.40
codegen_flags: <defaults>
</compile_context>

<pallas_src>
import functools

import jax
import jax.numpy as jnp
import numpy as np
from jax.experimental import pallas as pl
from jax.experimental.pallas import tpu as pltpu

KSIZE = 7
PAD = 3            # padding = 3 for kernel_size = 7 (as in the PyTorch module)
CHAN_GROUP = 8     # one full sublane tile per grouped load/store


# ---------------------------------------------------------------------------
# Host-side (weight-independent, cached) Toeplitz structure of the 7x7 conv.
# ---------------------------------------------------------------------------
@functools.lru_cache(maxsize=None)
def _toeplitz_structure(H, W):
    """Gather structure of the stride-1, pad-3, 7x7 cross-correlation.

    Returns (tap, valid):
      tap[q_in, p_out]   flat 0..48 tap index linking input pixel q_in to
                         output pixel p_out
      valid[q_in, p_out] whether that pair falls inside the kernel window
    Pure numpy, cached per (H, W).  Weights are applied per call, so training
    never sees stale weights.
    """
    hi = np.repeat(np.arange(H), W)                    # (HW,) row of flat pixel
    wi = np.tile(np.arange(W), H)                      # (HW,) col of flat pixel
    dy = hi[:, None] - hi[None, :] + PAD               # (HW_in, HW_out)
    dx = wi[:, None] - wi[None, :] + PAD
    valid = (dy >= 0) & (dy < KSIZE) & (dx >= 0) & (dx < KSIZE)
    tap = np.where(valid, dy * KSIZE + dx, 0).astype(np.int32)
    return jnp.asarray(tap), jnp.asarray(valid)


def _build_conv_matrix(w, H, W, dtype=jnp.bfloat16):
    """(2, 7, 7) conv weights -> (2, HW, HW) doubly-blocked Toeplitz matrices.

    m[c, q_in, p_out] = w[c, dy, dx] for the tap linking input pixel q_in to
    output pixel p_out (zero outside the kernel window).  A single vectorized
    gather over the cached structure; never touches the activations.
    """
    tap, valid = _toeplitz_structure(H, W)
    wf = w.reshape(2, KSIZE * KSIZE).astype(jnp.float32)           # (2, 49)
    m = jnp.where(valid[None], wf[:, tap], jnp.float32(0.0))       # (2, HW, HW)
    return m.astype(dtype)


# ---------------------------------------------------------------------------
# Kernel
# ---------------------------------------------------------------------------
def spatial_attention_kernel(m_ref, x_ref, o_ref):
    # m_ref: (2, HW, HW) bf16 VMEM — Toeplitz-packed conv weights (resident).
    # x_ref: (bb, C, HW)      VMEM — batch block of inputs, spatial flattened.
    # o_ref: (bb, C, HW)      VMEM
    _, C, _ = x_ref.shape

    # ---- channel mean / max: grouped (8-sublane) loads, XLU group reduces ---
    # TODO(synk): for very large C switch to lax.fori_loop over channel groups
    # so the unrolled kernel body stays small.
    g_end = min(CHAN_GROUP, C)
    x0 = x_ref[:, 0:g_end, :].astype(jnp.float32)              # (bb, <=8, HW)
    sum_acc = jnp.sum(x0, axis=1)                              # (bb, HW)
    max_acc = jnp.max(x0, axis=1)                              # (bb, HW)
    for gs in range(CHAN_GROUP, C, CHAN_GROUP):
        ge = min(gs + CHAN_GROUP, C)
        xg = x_ref[:, gs:ge, :].astype(jnp.float32)
        sum_acc = sum_acc + jnp.sum(xg, axis=1)
        max_acc = jnp.maximum(max_acc, jnp.max(xg, axis=1))
    avg = sum_acc * (1.0 / C)
    mx = max_acc

    # ---- 7x7 'same' conv over the 2 stat planes: two bf16 MXU matmuls ------
    mdt = m_ref.dtype
    conv = jnp.dot(avg.astype(mdt), m_ref[0],
                   preferred_element_type=jnp.float32)
    conv = conv + jnp.dot(mx.astype(mdt), m_ref[1],
                          preferred_element_type=jnp.float32)
    atten = jax.nn.sigmoid(conv)                               # (bb, HW), EUP

    # ---- broadcast multiply + grouped lane-dense stores ---------------------
    for gs in range(0, C, CHAN_GROUP):
        ge = min(gs + CHAN_GROUP, C)
        xg = x_ref[:, gs:ge, :].astype(jnp.float32)
        o_ref[:, gs:ge, :] = (xg * atten[:, None, :]).astype(o_ref.dtype)


# ---------------------------------------------------------------------------
# Wrapper
# ---------------------------------------------------------------------------
def _pick_batch_block(B, per_batch_bytes, m_bytes, budget_bytes=10 << 20):
    """Largest divisor of B whose VMEM footprint fits the budget.

    Footprint per grid step ~= 2*m_bytes (double-buffered resident weights) +
    bb*per_batch_bytes (double-buffered in/out blocks + f32 intermediates).
    Prefers multiples of 8 (full sublanes / MXU M-dim) and keeps >= 2 grid
    steps when B allows so a 'parallel' axis can span v7x's two TensorCores.
    """
    avail = max(budget_bytes - 2 * m_bytes, per_batch_bytes)
    bb = int(max(1, min(B, avail // per_batch_bytes)))
    if bb >= 8:
        bb -= bb % 8                    # full sublanes when B is large enough
    while B % bb:
        bb -= 1                         # exact tiling (no masking / padding)
    if B >= 2 and B // bb < 2:
        bb = max(1, bb // 2)            # keep both v7x TensorCores busy
        while B % bb:
            bb -= 1
    return bb


def spatial_attention(x, w, *, vmem_budget_bytes=10 << 20):
    """x: (B, C, H, W); w: (2, 7, 7) conv1 weight with the out-channel squeezed."""
    B, C, H, W = x.shape
    HW = H * W
    m = _build_conv_matrix(w, H, W, dtype=jnp.bfloat16)        # (2, HW, HW)
    m_bytes = 2 * HW * HW * m.dtype.itemsize
    xf = x.reshape(B, C, HW)                                   # free reshape

    # Per batch element inside a grid step: double-buffered in+out blocks plus
    # ~6 f32 (HW,) intermediate planes (sum/max/avg/mx/conv/atten).
    per_batch_bytes = 4 * C * HW * x.dtype.itemsize + 6 * HW * 4
    bb = _pick_batch_block(B, per_batch_bytes, m_bytes, vmem_budget_bytes)
    grid = (B // bb,)

    vmem_needed = 2 * m_bytes + bb * per_batch_bytes + (1 << 20)
    vmem_limit = int(min(max(vmem_needed, 16 << 20), 64 << 20))

    cost = pl.CostEstimate(
        flops=2 * B * (2 * HW) * HW + 6 * B * C * HW,
        transcendentals=B * HW,
        bytes_accessed=2 * B * C * HW * x.dtype.itemsize + m_bytes,
    )

    out = pl.pallas_call(
        spatial_attention_kernel,
        out_shape=jax.ShapeDtypeStruct((B, C, HW), x.dtype),
        grid=grid,
        in_specs=[
            # Conv matrices: constant block index -> fetched once, resident in
            # VMEM.  bf16 halves their footprint; for very large HW, single
            # buffering (pl.Buffered(1)) or the row-band TODO path applies.
            pl.BlockSpec((2, HW, HW), lambda i: (0, 0, 0)),
            pl.BlockSpec((bb, C, HW), lambda i: (i, 0, 0)),
        ],
        out_specs=pl.BlockSpec((bb, C, HW), lambda i: (i, 0, 0)),
        compiler_params=pltpu.CompilerParams(
            dimension_semantics=("parallel",),
            vmem_limit_bytes=vmem_limit,
        ),
        cost_estimate=cost,
    )(m, xf)
    return out.reshape(B, C, H, W)


# ---------------------------------------------------------------------------
# Pure-JAX reference (matches the PyTorch forward pass) and self-test
# ---------------------------------------------------------------------------
def _reference(x, w):
    avg = jnp.mean(x, axis=1, keepdims=True)
    mx = jnp.max(x, axis=1, keepdims=True)
    att = jnp.concatenate([avg, mx], axis=1)
    att = jax.lax.conv_general_dilated(
        att, w[None],  # (1, 2, 7, 7) OIHW
        window_strides=(1, 1),
        padding=[(PAD, PAD), (PAD, PAD)],
        dimension_numbers=("NCHW", "OIHW", "NCHW"),
    )
    return x * jax.nn.sigmoid(att)


if __name__ == "__main__":
    key = jax.random.PRNGKey(0)
    kx, kw = jax.random.split(key)

    B, C, H, W = 2, 4, 16, 16
    x = jax.random.normal(kx, (B, C, H, W), dtype=jnp.float32)
    # Deterministic synthetic conv1 weight: nn.Conv2d(2, 1, 7, bias=False)
    # -> (1, 2, 7, 7), out-channel dim squeezed to (2, 7, 7).
    w = jax.random.normal(kw, (2, KSIZE, KSIZE), dtype=jnp.float32) * 0.1

    out = jax.block_until_ready(spatial_attention(x, w))
    ref = _reference(x, w)

    assert out.shape == (B, C, H, W)
    # bf16 matmul operands with f32 accumulation -> bf16-scale tolerance.
    assert jnp.max(jnp.abs(out - ref)) < 2e-2, "mismatch vs reference"

    print("KERNEL_OK")
</pallas_src>

<mosaic_0001>
module attributes {stable_mosaic.version = 11 : i64} {
  func.func @spatial_attention_kernel(%arg0: i32, %arg1: memref<2x256x256xbf16, #tpu.memory_space<vmem>>, %arg2: memref<1x4x256xf32, #tpu.memory_space<vmem>>, %arg3: memref<1x4x256xf32, #tpu.memory_space<vmem>>) attributes {dimension_semantics = [#tpu.dimension_semantics<parallel>], iteration_bounds = array<i64: 2>, scalar_prefetch = 0 : i64, scratch_operands = 0 : i64, tpu.core_type = #tpu.core_type<tc>, window_params = [{pipeline_mode = #tpu.pipeline_mode<synchronous>, transform_indices = @transform_0, window_bounds = array<i64: 2, 256, 256>}, {transform_indices = @transform_1, window_bounds = array<i64: 1, 4, 256>}, {transform_indices = @transform_2, window_bounds = array<i64: 1, 4, 256>}]} {
    %c0 = arith.constant 0 : index
    %c0_0 = arith.constant 0 : index
    %c0_1 = arith.constant 0 : index
    %0 = vector.load %arg2[%c0, %c0_0, %c0_1] : memref<1x4x256xf32, #tpu.memory_space<vmem>>, vector<1x4x256xf32>
    %cst = arith.constant dense<0.000000e+00> : vector<1x256xf32>
    %1 = vector.multi_reduction <add>, %0, %cst [1] : vector<1x4x256xf32> to vector<1x256xf32>
    %cst_2 = arith.constant dense<0xFF800000> : vector<1x256xf32>
    %2 = vector.multi_reduction <maximumf>, %0, %cst_2 [1] : vector<1x4x256xf32> to vector<1x256xf32>
    %cst_3 = arith.constant 2.500000e-01 : f32
    %3 = vector.broadcast %cst_3 : f32 to vector<1x256xf32>
    %4 = arith.mulf %1, %3 : vector<1x256xf32>
    %5 = arith.truncf %4 : vector<1x256xf32> to vector<1x256xbf16>
    %c0_4 = arith.constant 0 : index
    %c0_5 = arith.constant 0 : index
    %c0_6 = arith.constant 0 : index
    %6 = vector.load %arg1[%c0_4, %c0_5, %c0_6] : memref<2x256x256xbf16, #tpu.memory_space<vmem>>, vector<1x256x256xbf16>
    %7 = vector.shape_cast %6 : vector<1x256x256xbf16> to vector<256x256xbf16>
    %cst_7 = arith.constant dense<0.000000e+00> : vector<1x256xf32>
    %8 = tpu.matmul %5, %7, %cst_7 {dimension_numbers = #tpu.dot_dimension_numbers<[1], [0], [0], [1], [0, 0, 1, 1], [], []>} : vector<1x256xbf16>, vector<256x256xbf16>, vector<1x256xf32> -> vector<1x256xf32>
    %9 = arith.truncf %2 : vector<1x256xf32> to vector<1x256xbf16>
    %c1 = arith.constant 1 : index
    %c0_8 = arith.constant 0 : index
    %c0_9 = arith.constant 0 : index
    %10 = vector.load %arg1[%c1, %c0_8, %c0_9] : memref<2x256x256xbf16, #tpu.memory_space<vmem>>, vector<1x256x256xbf16>
    %11 = vector.shape_cast %10 : vector<1x256x256xbf16> to vector<256x256xbf16>
    %cst_10 = arith.constant dense<0.000000e+00> : vector<1x256xf32>
    %12 = tpu.matmul %9, %11, %cst_10 {dimension_numbers = #tpu.dot_dimension_numbers<[1], [0], [0], [1], [0, 0, 1, 1], [], []>} : vector<1x256xbf16>, vector<256x256xbf16>, vector<1x256xf32> -> vector<1x256xf32>
    %13 = arith.addf %8, %12 : vector<1x256xf32>
    %14 = arith.negf %13 : vector<1x256xf32>
    %15 = math.exp %14 : vector<1x256xf32>
    %cst_11 = arith.constant 1.000000e+00 : f32
    %16 = vector.broadcast %cst_11 : f32 to vector<1x256xf32>
    %17 = arith.addf %16, %15 : vector<1x256xf32>
    %18 = arith.divf %16, %17 : vector<1x256xf32>
    %c0_12 = arith.constant 0 : index
    %c0_13 = arith.constant 0 : index
    %c0_14 = arith.constant 0 : index
    %19 = vector.load %arg2[%c0_12, %c0_13, %c0_14] : memref<1x4x256xf32, #tpu.memory_space<vmem>>, vector<1x4x256xf32>
    %20 = vector.shape_cast %18 : vector<1x256xf32> to vector<1x1x256xf32>
    %21 = vector.broadcast %20 : vector<1x1x256xf32> to vector<1x4x256xf32>
    %22 = arith.mulf %19, %21 : vector<1x4x256xf32>
    %c0_15 = arith.constant 0 : index
    %c0_16 = arith.constant 0 : index
    %c0_17 = arith.constant 0 : index
    %23 = vector.load %arg3[%c0_15, %c0_16, %c0_17] : memref<1x4x256xf32, #tpu.memory_space<vmem>>, vector<1x4x256xf32>
    tpu.vector_store %arg3[%c0_15, %c0_16, %c0_17], %22 {strides = array<i32>} : memref<1x4x256xf32, #tpu.memory_space<vmem>>, vector<1x4x256xf32>,
    return
  }
  func.func @transform_0(%arg0: i32) -> (i32, i32, i32) {
    %c0_i32 = arith.constant 0 : i32
    %c0_i32_0 = arith.constant 0 : i32
    %c0_i32_1 = arith.constant 0 : i32
    %c0_i32_2 = arith.constant 0 : i32
    return %c0_i32, %c0_i32_0, %c0_i32_1 : i32, i32, i32
  }
  func.func @transform_1(%arg0: i32) -> (i32, i32, i32) {
    %c0_i32 = arith.constant 0 : i32
    %c0_i32_0 = arith.constant 0 : i32
    %c0_i32_1 = arith.constant 0 : i32
    return %arg0, %c0_i32, %c0_i32_0 : i32, i32, i32
  }
  func.func @transform_2(%arg0: i32) -> (i32, i32, i32) {
    %c0_i32 = arith.constant 0 : i32
    %c0_i32_0 = arith.constant 0 : i32
    %c0_i32_1 = arith.constant 0 : i32
    return %arg0, %c0_i32, %c0_i32_0 : i32, i32, i32
  }
}

</mosaic_0001>

<bundles_post_ra>
// kernel: tpu_custom_call.1
= control target key start
LH: loop header
LB: loop body
LE: loop exit
PB: predicated region body
PF: predicated region fallthrough
CT: control target
= control target key end

     0   :  { %7 = vsyncpa [#allocation3], 0  ;;  %s1418_s0 = inlined_call_operand.hbm [shape: bf16[2,256,256], index: 0, kind: input, shape index: {}]   ;;  %s1419_s1 = inlined_call_operand.hbm [shape: f32[2,4,256], index: 1, kind: input, shape index: {}]   ;;  %s1420_s2 = inlined_call_operand.hbm [shape: f32[2,4,256], index: 2, kind: output, shape index: {}]  }
   0x1   :  { %8 = vsyncpa [#allocation6], 0 }
   0x2   :  { %10 = vsyncpa [#allocation6 + $0x1], 0 }
   0x3   :  { %11 = vsyncpa [#allocation4], 0 }
   0x4   :  { %13 = vsyncpa [#allocation4 + $0x1], 0  ;;  %s1204_s9 = smov 0   ;;  %s1206_s10 = smov 0  }
   0x5   :  { %s1208_s11 = smov 0   ;;  %s1210_s12 = smov 0  }
   0x6 LB: > { %s1225_s13 = sadd.s32 4294967295, %s1182_s12   ;;  %s804_s14 = sadd.s32 4294967294, %s1182_s12   ;;  %s1182_s12 = sphi %s1210_s12, %s1440_s12   ;;  %s1178_s11 = sphi %s1208_s11, %s1439_s11   ;;  %s1174_s10 = sphi %s1206_s10, %s1438_s10   ;;  %s1170_s9 = sphi %s1204_s9, %s1437_s9  }
   0x7   : > { %p60_p0 = scmp.ne.s32.totalorder %s1174_s10, %s1170_s9  ;;  %p1421_p1 = scmp.eq.s32.totalorder %s1225_s13, 0 }
   0x8   : > { %p90_p3 = scmp.eq.s32.totalorder %s804_s14, 1  ;;  %p805_p5 = scmp.ge.s32.totalorder %s1182_s12, 1 }
   0x9   : > { %p1234_p4 = por %p1421_p1, %p60_p0  ;;  %p97_p7 = scmp.lt.s32.totalorder %s1182_s12, 3 }
   0xa   : > { %p1239_p6 = por %p90_p3, %p60_p0  ;;  %s1184_s18 = smov [#allocation2]  }
   0xb   : > { %s1424_s15 = scalar_select %p1234_p4, 1, 0 }
   0xc   : > { %s1425_s16 = scalar_select %p1239_p6, 1, 0 }
   0xd   : > { %p1244_p8 = pnand %p805_p5, %p97_p7  ;;  %s109_s19 = sshll.u32 %s1184_s18, 4  ;;  %s1248_s19 = int_to_ptr.vmem [resolvable:$true] %s109_s19 }
   0xe   : > { %s1260_s21 = sadd.s32 1, %s1182_s12   ;;  %s47_s22 = sadd.s32 1, %s1178_s11 }
   0xf   : > { %s1426_s17 = scalar_select %p1244_p8, 1, 0 }
  0x10   : > { %p898_p9 = pneg %p1244_p8  ;;  %s44_s23 = ssub.s32 %s1182_s12, %s1260_s21 }
  0x11   : > { %s1054_s26 = scalar_lea.hbm %s1418_s0, 8192 }
  0x12   : > { %p1255_p11 = pnand %p898_p9, %p1421_p1  ;;  %p1055_p12 = scmp.ne.s32.totalorder %s1418_s0, %s1054_s26 }
  0x13   : > { %p1061_p5 = scmp.lt.u32.totalorder %s1054_s26, %s1418_s0 }
  0x14   : > { %p1056_p13 = pneg %p1255_p11 }
  0x16   : > { %p1057_p0 = pnand %p1056_p13, %p1055_p12 }
  0x18   : > { %p1058_p3 = pneg %p1057_p0 }
  0x1a   : > { %p1063_p7 = pnand %p1061_p5, %p1058_p3 }
  0x1c   : > { %1066 = shalt.err (!%p1063_p7)
}
  0x1d   : > { %s1067_s3 = scalar_lea.vmem %s1248_s19, 8192  ;;  %p1075_p2 = scmp.lt.s32.totalorder %s1248_s19, %s1248_s19 }
  0x1e   : > { %p1068_p9 = scmp.ne.s32.totalorder %s1248_s19, %s1067_s3  ;;  %p1076_p6 = scmp.lt.s32.totalorder %s1067_s3, %s1067_s3 }
  0x20   : > { %p1070_p10 = pnand %p1068_p9, %p1056_p13  ;;  %p1077_p4 = por %p1076_p6, %p1075_p2 }
  0x22   : > { %p1071_p1 = pneg %p1070_p10 }
  0x24   : > { %p1078_p8 = pnand %p1077_p4, %p1071_p1 }
  0x26   : > { %1081 = shalt.err (!%p1078_p8)
}
  0x27   : > { %s1185_s4 = smov 128   ;;  %s1186_s5 = smov 8  }
  0x28   : > { %901 = dma.hbm_to_vmem [thread:$0]  (!%p1255_p11), %s1418_s0, 8192, %s1248_s19, [#allocation3], %s1185_s4, %s1185_s4, %s1186_s5  }
  0x29   : > { %p45_p2 = scmp.eq.s32.totalorder %s44_s23, 0  ;;  %p54_p1 = scmp.ne.s32.totalorder %s1178_s11, %s1174_s10 }
  0x2a   : > { %p55_p4 = scmp.eq.s32.totalorder %s1182_s12, 0  ;;  %p911_p6 = scmp.lt.s32.totalorder %s1182_s12, 2 }
  0x2b   : > { %s1291_s8 = scalar_select %p45_p2, %s1178_s11, %s47_s22  }
  0x2c   : > { %p56_p8 = por %p55_p4, %p54_p1  ;;  %p1428_p10 = scmp.eq.s32.totalorder %s1225_s13, 1 }
  0x2d   : > { %s123_s18 = sand.u32 1, %s1178_s11   ;;  %s886_s24 = sshll.u32 %s1182_s12, 7 }
  0x2e   : > { %p1295_p12 = por %p1428_p10, %p54_p1  ;;  %s808_s25 = sshll.u32 %s123_s18, 3 }
  0x2f   : > { %s1304_s27 = scalar_lea.hbm %s1419_s1, %s886_s24  ;;  %s127_s19 = scalar_lea.vmem [#allocation5], %s808_s25 }
  0x30   : > { %s135_s22 = sshll.u32 %s127_s19, 4  ;;  %p1306_p11 = pnand %p911_p6, %p56_p8  ;;  %s1310_s22 = int_to_ptr.vmem [resolvable:$true] %s135_s22 }
  0x31   : > { %s124_s28 = scalar_lea.sflag [#allocation6], %s123_s18  ;;  %s1082_s29 = scalar_lea.hbm %s1304_s27, 128 }
  0x32   : > { %p1083_p13 = scmp.ne.s32.totalorder %s1304_s27, %s1082_s29  ;;  %p1084_p0 = pneg %p1306_p11 }
  0x33   : > { %s1087_s4 = scalar_lea.hbm %s1419_s1, 256  ;;  %p1088_p7 = scmp.lt.u32.totalorder %s1304_s27, %s1419_s1 }
  0x34   : > { %p1085_p3 = pnand %p1084_p0, %p1083_p13  ;;  %p1089_p9 = scmp.lt.u32.totalorder %s1087_s4, %s1082_s29 }
  0x35   : > { %p1091_p1 = scmp.lt.u32.totalorder %s1082_s29, %s1304_s27 }
  0x36   : > { %p1086_p5 = pneg %p1085_p3  ;;  %p1090_p2 = por %p1089_p9, %p1088_p7 }
  0x38   : > { %p1092_p4 = por %p1091_p1, %p1090_p2 }
  0x3a   : > { %p1093_p6 = pnand %p1092_p4, %p1086_p5 }
  0x3c   : > { %1096 = shalt.err (!%p1093_p6)
}
  0x3d   : > { %s1097_s7 = scalar_lea.vmem %s1310_s22, 128  ;;  %s1187_s18 = smov [#allocation5]  }
  0x3e   : > { %p1098_p8 = scmp.ne.s32.totalorder %s1310_s22, %s1097_s7  ;;  %s1102_s24 = sshll.u32 %s1187_s18, 4  ;;  %s1103_s24 = int_to_ptr.vmem [resolvable:$false] %s1102_s24 }
  0x3f   : > { %s1104_s25 = scalar_lea.vmem %s1103_s24, 256  ;;  %p1105_p3 = scmp.lt.s32.totalorder %s1310_s22, %s1103_s24 }
  0x40   : > { %p1100_p10 = pnand %p1098_p8, %p1084_p0  ;;  %p1106_p7 = scmp.lt.s32.totalorder %s1104_s25, %s1097_s7 }
  0x42   : > { %p1101_p13 = pneg %p1100_p10  ;;  %p1107_p9 = por %p1106_p7, %p1105_p3 }
  0x44   : > { %p1108_p2 = pnand %p1107_p9, %p1101_p13 }
  0x46   : > { %1111 = shalt.err (!%p1108_p2)
}
  0x47   : > { %905 = dma.hbm_to_vmem [thread:$0]  (!%p1306_p11), %s1304_s27, 128, %s1310_s22, %s124_s28  }
  0x48   : > { %p1431_p5 = scmp.ne.s32.totalorder %s1426_s17, 0 }
  0x49   : > { %p1432_p0 = scmp.eq.s32.totalorder (!%p1431_p5), %s1225_s13, 0 }
  0x4a   : > { %144 = sbr.rel (%p1431_p5) target bundleno = 413 (0x19d), region = 28 }
  0x51   : > { %1157 = dma.done.wait (%p1432_p0), [#allocation3], 8192   ;;  %p1433_p1 = pmov %p1432_p0 }
  0x52   : > { %s1344_s20 = sand.u32 1, %s1174_s10   ;;  %p1434_p11 = scmp.ne.s32.totalorder %s1424_s15, 0 }
  0x53   : > { %1159 = vsyncadd (%p1433_p1), [#allocation3], 4294959104  ;;  %s813_s26 = sshll.u32 %s1344_s20, 3  ;;  %s151_s19 = scalar_lea.sflag [#allocation6], %s1344_s20 }
  0x54   : > { %s1350_s27 = scalar_lea.vmem [#allocation5], %s813_s26 }
  0x55   : > { %1161 = dma.done.wait (%p1434_p11), %s151_s19, 128  }
  0x56   : > { %1163 = vsyncadd (%p1434_p11), %s151_s19, 4294967168  ;;  %v949_v0 = vld [vmem:[#allocation2 + $0x104] ss:$8 sps:$4 sm:$0xff]   ;;  %v953_v2 = vld [vmem:[#allocation2 + $0x100] ss:$8 sps:$4 sm:$0xff]   ;;  %vm179_vm0 = vcmask 1043456  }
  0x57   : > { %v951_v1 = vld [vmem:[#allocation2 + $0x4] ss:$8 sps:$4 sm:$0xff]   ;;  %439 = vmatprep.subr.bf16.mxu1 %v949_v0  ;;  %v954_v3 = vld [vmem:[#allocation2] ss:$8 sps:$4 sm:$0xff]   ;;  %v955_v4 = vld [vmem:[#allocation2 + $0x114] ss:$8 sps:$4 sm:$0xff]  }
  0x58   : > { %640 = vmatprep.subr.bf16.mxu0 %v951_v1  ;;  %440 = vmatpush1.bf16.msra.mxu1 %v953_v2  ;;  %v957_v5 = vld [vmem:[#allocation2 + $0x14] ss:$8 sps:$4 sm:$0xff]   ;;  %v959_v6 = vld [vmem:[#allocation2 + $0x110] ss:$8 sps:$4 sm:$0xff]   ;;  %v961_v8 = vld [vmem:[#allocation2 + $0x124] ss:$8 sps:$4 sm:$0xff]  }
  0x59   : > { %641 = vmatpush1.bf16.msra.mxu0 %v954_v3  ;;  %441 = vmatprep.subr.bf16.mxu1 %v955_v4  ;;  %v960_v7 = vld [vmem:[#allocation2 + $0x10] ss:$8 sps:$4 sm:$0xff]   ;;  %v963_v9 = vld [vmem:[#allocation2 + $0x24] ss:$8 sps:$4 sm:$0xff]   ;;  %v965_v10 = vld [vmem:[#allocation2 + $0x120] ss:$8 sps:$4 sm:$0xff]  }
  0x5a   : > { %642 = vmatprep.subr.bf16.mxu0 %v957_v5  ;;  %v966_v11 = vld [vmem:[#allocation2 + $0x20] ss:$8 sps:$4 sm:$0xff]   ;;  %v967_v12 = vld [vmem:[#allocation2 + $0x134] ss:$8 sps:$4 sm:$0xff]   ;;  %v971_v14 = vld [vmem:[#allocation2 + $0x130] ss:$8 sps:$4 sm:$0xff]  }
  0x5b   : > { %v969_v13 = vld [vmem:[#allocation2 + $0x34] ss:$8 sps:$4 sm:$0xff]   ;;  %v972_v15 = vld [vmem:[#allocation2 + $0x30] ss:$8 sps:$4 sm:$0xff]   ;;  %v973_v16 = vld [vmem:[#allocation2 + $0x144] ss:$8 sps:$4 sm:$0xff]  }
  0x5c   : > { %442 = vmatpush1.bf16.msra.mxu1 %v959_v6  ;;  %v975_v17 = vld [vmem:[#allocation2 + $0x44] ss:$8 sps:$4 sm:$0xff]   ;;  %v977_v18 = vld [vmem:[#allocation2 + $0x140] ss:$8 sps:$4 sm:$0xff]   ;;  %v979_v20 = vld [vmem:[#allocation2 + $0x154] ss:$8 sps:$4 sm:$0xff]  }
  0x5d   : > { %643 = vmatpush1.bf16.msra.mxu0 %v960_v7  ;;  %443 = vmatprep.subr.bf16.mxu1 %v961_v8  ;;  %v978_v19 = vld [vmem:[#allocation2 + $0x40] ss:$8 sps:$4 sm:$0xff]   ;;  %v981_v21 = vld [vmem:[#allocation2 + $0x54] ss:$8 sps:$4 sm:$0xff]   ;;  %v983_v22 = vld [vmem:[#allocation2 + $0x150] ss:$8 sps:$4 sm:$0xff]  }
  0x5e   : > { %644 = vmatprep.subr.bf16.mxu0 %v963_v9  ;;  %v984_v23 = vld [vmem:[#allocation2 + $0x50] ss:$8 sps:$4 sm:$0xff]   ;;  %v985_v24 = vld [vmem:[#allocation2 + $0x164] ss:$8 sps:$4 sm:$0xff]   ;;  %v989_v26 = vld [vmem:[#allocation2 + $0x160] ss:$8 sps:$4 sm:$0xff]  }
  0x5f   : > { %v987_v25 = vld [vmem:[#allocation2 + $0x64] ss:$8 sps:$4 sm:$0xff]   ;;  %v990_v27 = vld [vmem:[#allocation2 + $0x60] ss:$8 sps:$4 sm:$0xff]   ;;  %v991_v28 = vld [vmem:[#allocation2 + $0x174] ss:$8 sps:$4 sm:$0xff]  }
  0x60   : > { %444 = vmatpush1.bf16.msra.mxu1 %v965_v10  ;;  %v993_v29 = vld [vmem:[#allocation2 + $0x74] ss:$8 sps:$4 sm:$0xff]   ;;  %v995_v30 = vld [vmem:[#allocation2 + $0x170] ss:$8 sps:$4 sm:$0xff]   ;;  %v997_v32 = vld [vmem:[#allocation2 + $0x184] ss:$8 sps:$4 sm:$0xff]  }
  0x61   : > { %645 = vmatpush1.bf16.msra.mxu0 %v966_v11  ;;  %445 = vmatprep.subr.bf16.mxu1 %v967_v12  ;;  %v996_v31 = vld [vmem:[#allocation2 + $0x70] ss:$8 sps:$4 sm:$0xff]   ;;  %v999_v33 = vld [vmem:[#allocation2 + $0x84] ss:$8 sps:$4 sm:$0xff]   ;;  %v1001_v34 = vld [vmem:[#allocation2 + $0x180] ss:$8 sps:$4 sm:$0xff]  }
  0x62   : > { %646 = vmatprep.subr.bf16.mxu0 %v969_v13  ;;  %v1002_v35 = vld [vmem:[#allocation2 + $0x80] ss:$8 sps:$4 sm:$0xff]   ;;  %v1003_v36 = vld [vmem:[#allocation2 + $0x194] ss:$8 sps:$4 sm:$0xff]   ;;  %v1007_v38 = vld [vmem:[#allocation2 + $0x190] ss:$8 sps:$4 sm:$0xff]  }
  0x63   : > { %v1005_v37 = vld [vmem:[#allocation2 + $0x94] ss:$8 sps:$4 sm:$0xff]   ;;  %v1008_v39 = vld [vmem:[#allocation2 + $0x90] ss:$8 sps:$4 sm:$0xff]   ;;  %v1009_v40 = vld [vmem:[#allocation2 + $0x1a4] ss:$8 sps:$4 sm:$0xff]  }
  0x64   : > { %446 = vmatpush1.bf16.msra.mxu1 %v971_v14  ;;  %v1011_v41 = vld [vmem:[#allocation2 + $0xa4] ss:$8 sps:$4 sm:$0xff]   ;;  %v1013_v42 = vld [vmem:[#allocation2 + $0x1a0] ss:$8 sps:$4 sm:$0xff]   ;;  %v1015_v44 = vld [vmem:[#allocation2 + $0x1b4] ss:$8 sps:$4 sm:$0xff]  }
  0x65   : > { %647 = vmatpush1.bf16.msra.mxu0 %v972_v15  ;;  %447 = vmatprep.subr.bf16.mxu1 %v973_v16  ;;  %v1014_v43 = vld [vmem:[#allocation2 + $0xa0] ss:$8 sps:$4 sm:$0xff]   ;;  %v1017_v45 = vld [vmem:[#allocation2 + $0xb4] ss:$8 sps:$4 sm:$0xff]   ;;  %v1019_v50 = vld [vmem:[#allocation2 + $0x1b0] ss:$8 sps:$4 sm:$0xff]  }
  0x66   : > { %648 = vmatprep.subr.bf16.mxu0 %v975_v17  ;;  %v1357_v46 = vld [vmem:[%s1350_s27] sm:$0xff]  ;;  %v1020_v51 = vld [vmem:[#allocation2 + $0xb0] ss:$8 sps:$4 sm:$0xff]   ;;  %v1027_v4 = vld [vmem:[#allocation2 + $0x1d4] ss:$8 sps:$4 sm:$0xff]   ;;  %s887_s15 = sshll.u32 %s1225_s13, 7 }
  0x67   : > { %v177_v47 = vcombine.high %v1357_v46, %v1357_v46  ;;  %v194_v48 = vsel %vm179_vm0, %v1357_v46, -inf  ;;  %v180_v49 = vsel %vm179_vm0, %v1357_v46, 0.0  ;;  %v1021_v54 = vld [vmem:[#allocation2 + $0x1c4] ss:$8 sps:$4 sm:$0xff]   ;;  %v1025_v62 = vld [vmem:[#allocation2 + $0x1c0] ss:$8 sps:$4 sm:$0xff]   ;;  %s1374_s29 = scalar_lea.hbm %s1420_s2, %s887_s15 }
  0x68   : > { %448 = vmatpush1.bf16.msra.mxu1 %v977_v18  ;;  %v195_v52 = vrot.slane %v194_v48, 4  ;;  %v181_v53 = vrot.slane %v180_v49, 4  ;;  %v1023_v55 = vld [vmem:[#allocation2 + $0xc4] ss:$8 sps:$4 sm:$0xff]   ;;  %v1026_v63 = vld [vmem:[#allocation2 + $0xc0] ss:$8 sps:$4 sm:$0xff]  }
  0x69   : > { %649 = vmatpush1.bf16.msra.mxu0 %v978_v19  ;;  %449 = vmatprep.subr.bf16.mxu1 %v979_v20  ;;  %v201_v56 = vsel %vm179_vm0, %v177_v47, -inf  ;;  %v187_v57 = vsel %vm179_vm0, %v177_v47, 0.0  ;;  %v1029_v5 = vld [vmem:[#allocation2 + $0xd4] ss:$8 sps:$4 sm:$0xff]   ;;  %v1031_v10 = vld [vmem:[#allocation2 + $0x1d0] ss:$8 sps:$4 sm:$0xff]  }
  0x6a   : > { %650 = vmatprep.subr.bf16.mxu0 %v981_v21  ;;  %v202_v58 = vrot.slane %v201_v56, 4  ;;  %v188_v59 = vrot.slane %v187_v57, 4  ;;  %v196_v60 = vmax.f32 %v194_v48, %v195_v52  ;;  %v182_v61 = vadd.f32 %v181_v53, %v180_v49  ;;  %v1032_v11 = vld [vmem:[#allocation2 + $0xd0] ss:$8 sps:$4 sm:$0xff]   ;;  %v1033_v15 = vld [vmem:[#allocation2 + $0x1e4] ss:$8 sps:$4 sm:$0xff]  }
  0x6b   : > { %v1035_v16 = vld [vmem:[#allocation2 + $0xe4] ss:$8 sps:$4 sm:$0xff]   ;;  %v1037_v21 = vld [vmem:[#allocation2 + $0x1e0] ss:$8 sps:$4 sm:$0xff]   ;;  %v693_v53 = vlaneseq  ;;  %s174_s17 = scalar_lea.vmem [#allocation7], %s813_s26  ;;  %s708_s30 = scalar_lea.sflag [#allocation4], %s1344_s20 }
  0x6c   : > { %450 = vmatpush1.bf16.msra.mxu1 %v983_v22  ;;  %v203_v0 = vmax.f32 %v201_v56, %v202_v58  ;;  %v189_v1 = vadd.f32 %v188_v59, %v187_v57  ;;  %v197_v2 = vrot.slane %v196_v60, 2  ;;  %v183_v3 = vrot.slane %v182_v61, 2  ;;  %v1038_v22 = vld [vmem:[#allocation2 + $0xe0] ss:$8 sps:$4 sm:$0xff]   ;;  %s722_s22 = sshll.u32 %s174_s17, 4  ;;  %s1188_s13 = smov [#allocation7]   ;;  %s1376_s22 = int_to_ptr.vmem [resolvable:$true] %s722_s22 }
  0x6d   : > { %651 = vmatpush1.bf16.msra.mxu0 %v984_v23  ;;  %451 = vmatprep.subr.bf16.mxu1 %v985_v24  ;;  %s1112_s3 = scalar_lea.vmem %s1376_s22, 128  ;;  %s1116_s4 = sshll.u32 %s1188_s13, 4  ;;  %s1117_s4 = int_to_ptr.vmem [resolvable:$false] %s1116_s4 }
  0x6e   : > { %652 = vmatprep.subr.bf16.mxu0 %v987_v25  ;;  %v204_v6 = vrot.slane %v203_v0, 2  ;;  %v190_v7 = vrot.slane %v189_v1, 2  ;;  %v184_v8 = vadd.f32 %v183_v3, %v182_v61  ;;  %v198_v9 = vmax.f32 %v196_v60, %v197_v2  ;;  %v1039_v25 = vld [vmem:[#allocation2 + $0x1f4] ss:$8 sps:$4 sm:$0xff]   ;;  %p1113_p4 = scmp.ne.s32.totalorder %s1376_s22, %s1112_s3  ;;  %s1118_s5 = scalar_lea.vmem %s1117_s4, 256 }
  0x6f   : > { %p1119_p10 = scmp.lt.s32.totalorder %s1376_s22, %s1117_s4  ;;  %p1120_p13 = scmp.lt.s32.totalorder %s1118_s5, %s1112_s3 }
  0x70   : > { %452 = vmatpush1.bf16.msra.mxu1 %v989_v26  ;;  %v205_v12 = vmax.f32 %v203_v0, %v204_v6  ;;  %v191_v13 = vadd.f32 %v190_v7, %v189_v1  ;;  %v185_v14 = vrot.slane %v184_v8, 1  ;;  %v199_v19 = vrot.slane %v198_v9, 1  ;;  %v1041_v26 = vld [vmem:[#allocation2 + $0xf4] ss:$8 sps:$4 sm:$0xff]   ;;  %p1114_p6 = pnand %p1113_p4, %p1295_p12 }
  0x71   : > { %653 = vmatpush1.bf16.msra.mxu0 %v990_v27  ;;  %453 = vmatprep.subr.bf16.mxu1 %v991_v28  ;;  %p1121_p3 = por %p1120_p13, %p1119_p10 }
  0x72   : > { %654 = vmatprep.subr.bf16.mxu0 %v993_v29  ;;  %v206_v17 = vrot.slane %v205_v12, 1  ;;  %v192_v18 = vrot.slane %v191_v13, 1  ;;  %v186_v20 = vadd.f32 %v185_v14, %v184_v8  ;;  %v200_v29 = vmax.f32 %v198_v9, %v199_v19  ;;  %p1115_p8 = pneg %p1114_p6 }
  0x74   : > { %454 = vmatpush1.bf16.msra.mxu1 %v995_v30  ;;  %v207_v23 = vmax.f32 %v205_v12, %v206_v17  ;;  %v193_v24 = vadd.f32 %v192_v18, %v191_v13  ;;  %v208_v30 = vmul.f32 0.25, %v186_v20  ;;  %p1122_p7 = pnand %p1121_p3, %p1115_p8 }
  0x75   : > { %655 = vmatpush1.bf16.msra.mxu0 %v996_v31  ;;  %455 = vmatprep.subr.bf16.mxu1 %v997_v32  ;;  %v1043_v31 = vld [vmem:[#allocation2 + $0x1f0] ss:$8 sps:$4 sm:$0xff]  }
  0x76   : > { %656 = vmatprep.subr.bf16.mxu0 %v999_v33  ;;  %v245_v27 = vpack.c.bf16 %v207_v23, %v207_v23  ;;  %v209_v28 = vmul.f32 0.25, %v193_v24  ;;  %v1044_v32 = vld [vmem:[#allocation2 + $0xf0] ss:$8 sps:$4 sm:$0xff]  }
  0x78   : > { %456 = vmatpush1.bf16.msra.mxu1 %v1001_v34  ;;  %v211_v33 = vpack.c.bf16 %v209_v28, %v209_v28  ;;  %471 = vmatprep.mubr.bf16.mxu1 %v245_v27  ;;  %v244_v34 = vpack.c.bf16 %v200_v29, %v200_v29 }
  0x79   : > { %657 = vmatpush1.bf16.msra.mxu0 %v1002_v35  ;;  %457 = vmatprep.subr.bf16.mxu1 %v1003_v36  ;;  %v210_v35 = vpack.c.bf16 %v208_v30, %v208_v30 }
  0x7a   : > { %658 = vmatprep.subr.bf16.mxu0 %v1005_v37  ;;  %672 = vmatprep.mubr.bf16.mxu0 %v211_v33 }
  0x7c   : > { %458 = vmatpush1.bf16.msra.mxu1 %v1007_v38 }
  0x7d   : > { %659 = vmatpush1.bf16.msra.mxu0 %v1008_v39  ;;  %459 = vmatprep.subr.bf16.mxu1 %v1009_v40 }
  0x7e   : > { %660 = vmatprep.subr.bf16.mxu0 %v1011_v41 }
  0x80   : > { %460 = vmatpush1.bf16.msra.mxu1 %v1013_v42 }
  0x81   : > { %661 = vmatpush1.bf16.msra.mxu0 %v1014_v43  ;;  %461 = vmatprep.subr.bf16.mxu1 %v1015_v44 }
  0x82   : > { %662 = vmatprep.subr.bf16.mxu0 %v1017_v45 }
  0x84   : > { %462 = vmatpush1.bf16.msra.mxu1 %v1019_v50 }
  0x85   : > { %663 = vmatpush1.bf16.msra.mxu0 %v1020_v51  ;;  %463 = vmatprep.subr.bf16.mxu1 %v1021_v54  ;;  %v694_v54 = vshrl.u32 %v693_v53, 7 }
  0x86   : > { %664 = vmatprep.subr.bf16.mxu0 %v1023_v55 }
  0x87   : > { %v695_v55 = vsub.s32 0, %v694_v54 }
  0x88   : > { %464 = vmatpush1.bf16.msra.mxu1 %v1025_v62 }
  0x89   : > { %665 = vmatpush1.bf16.msra.mxu0 %v1026_v63  ;;  %465 = vmatprep.subr.bf16.mxu1 %v1027_v4 }
  0x8a   : > { %666 = vmatprep.subr.bf16.mxu0 %v1029_v5 }
  0x8c   : > { %466 = vmatpush1.bf16.msra.mxu1 %v1031_v10 }
  0x8d   : > { %667 = vmatpush1.bf16.msra.mxu0 %v1032_v11  ;;  %467 = vmatprep.subr.bf16.mxu1 %v1033_v15 }
  0x8e   : > { %668 = vmatprep.subr.bf16.mxu0 %v1035_v16 }
  0x90   : > { %468 = vmatpush1.bf16.msra.mxu1 %v1037_v21 }
  0x91   : > { %669 = vmatpush1.bf16.msra.mxu0 %v1038_v22  ;;  %469 = vmatprep.subr.bf16.mxu1 %v1039_v25 }
  0x92   : > { %670 = vmatprep.subr.bf16.mxu0 %v1041_v26 }
  0x94   : > { %470 = vmatpush1.bf16.msra.mxu1 %v1043_v31 }
  0x95   : > { %671 = vmatpush1.bf16.msra.mxu0 %v1044_v32 }
  0x97   : > { %472 = vmatmul.mubr.bf16.vlgmr.msra.gmra.mrb[0].mxu1 %v244_v34 }
  0x98   : > { %673 = vmatmul.mubr.bf16.vlgmr.msra.gmra.mrb[0].mxu0 %v210_v35 }
 0x16a   : > { %v473_v36 = vpop.f32.mrb[0].mxu1 }
 0x16b   : > { %v674_v37 = vpop.f32.mrb[0].mxu0  ;;  %v475_v39 = vpop.f32.mrb[1].mxu1 }
 0x16c   : > { %v675_v38 = vadd.f32 %v674_v37, %v473_v36  ;;  %v676_v40 = vpop.f32.mrb[1].mxu0  ;;  %v477_v42 = vpop.f32.mrb[2].mxu1 }
 0x16d   : > { %v677_v41 = vadd.f32 %v676_v40, %v475_v39  ;;  %v678_v43 = vpop.f32.mrb[2].mxu0  ;;  %v478_v45 = vpop.f32.mrb[3].mxu1 }
 0x16e   : > { %v879_v44 = vmul.f32 -1.442695, %v675_v38  ;;  %v679_v47 = vpop.f32.mrb[3].mxu0 }
 0x16f   : > { %v880_v48 = vmul.f32 -1.442695, %v677_v41 }
 0x170   : > { %1046 = vpow2.f32 %v879_v44 }
 0x171   : > { %1048 = vpow2.f32 %v880_v48 }
 0x17a   : > { %v1047_v49 = vpop.eup %1046 }
 0x17b   : > { %v1049_v50 = vpop.eup %1048  ;;  %v687_v51 = vadd.f32 1.0, %v1047_v49 }
 0x17c   : > { %v688_v52 = vadd.f32 1.0, %v1049_v50 }
 0x17d   : > { %1050 = vrcp.f32 %v687_v51 }
 0x17e   : > { %1052 = vrcp.f32 %v688_v52 }
 0x187   : > { %v1051_v56 = vpop.eup %1050 }
 0x188   : > { %v1053_v57 = vpop.eup %1052  ;;  %v696_v58 = vrot.slane %v1051_v56, %v695_v55 }
 0x189   : > { %v700_v59 = vrot.slane %v1053_v57, %v695_v55 }
 0x18b   : > { %v703_v60 = vcombine.low %v696_v58, %v700_v59 }
 0x18d   : > { %v705_v61 = vmul.f32 %v703_v60, %v1357_v46 }
 0x18f   : > { %706 = vst [vmem:[%s174_s17] sm:$0xff] %v705_v61 }
 0x190   : > { %1125 = shalt.err (!%p1122_p7)
}
 0x191   : > { %s1126_s6 = scalar_lea.hbm %s1374_s29, 128  ;;  %s1130_s24 = scalar_lea.hbm %s1420_s2, 256 }
 0x192   : > { %p1127_p9 = scmp.ne.s32.totalorder %s1374_s29, %s1126_s6  ;;  %p1131_p0 = scmp.lt.u32.totalorder %s1374_s29, %s1420_s2 }
 0x193   : > { %p1132_p1 = scmp.lt.u32.totalorder %s1130_s24, %s1126_s6  ;;  %p1134_p4 = scmp.lt.u32.totalorder %s1126_s6, %s1374_s29 }
 0x194   : > { %p1128_p2 = pnand %p1127_p9, %p1295_p12 }
 0x195   : > { %p1133_p11 = por %p1132_p1, %p1131_p0 }
 0x196   : > { %p1129_p5 = pneg %p1128_p2 }
 0x197   : > { %p1135_p6 = por %p1134_p4, %p1133_p11 }
 0x199   : > { %p1136_p8 = pnand %p1135_p6, %p1129_p5 }
 0x19b   : > { %1139 = shalt.err (!%p1136_p8)
}
 0x19c   : > { %896 = dma.vmem_to_hbm [thread:$0]  (%p1295_p12), %s1376_s22, 128, %s1374_s29, %s708_s30  }
 0x19d PF: > { %s734_s26 = sand.u32 1, %s1170_s9   ;;  %p1435_p10 = scmp.ne.s32.totalorder %s1425_s16, 0 }
 0x19e   : > { %p1436_p13 = scmp.ge.s32.totalorder %s1182_s12, 2  ;;  %s735_s19 = scalar_lea.sflag [#allocation4], %s734_s26 }
 0x1a0   : > { %p907_p3 = pnand %p1436_p13, %p1435_p10 }
 0x1a2   : > { %1165 = dma.done.wait (!%p907_p3), %s735_s19, 128  }
 0x1a3   : > { %1167 = vsyncadd (!%p907_p3), %s735_s19, 4294967168  ;;  %p16_p7 = scmp.ge.s32.totalorder %s1260_s21, 4   ;;  %s1437_s9 = smov %s1174_s10 }
 0x1a4   : > { %s1438_s10 = smov %s1178_s11  ;;  %s1439_s11 = smov %s1291_s8 }
 0x1a5   : > { %s1440_s12 = smov %s1260_s21  ;;  %18 = sbr.rel (!%p16_p7) target bundleno = 6 (0x6), region = 79 }
 0x1ac   :  { %740 = vsyncpa [#allocation3], 1 }
 0x1ad   :  { %742 = vsyncpa [#allocation3 + $0x1], 1 }
 0x1ae   :  { %743 = vsyncpa [#allocation6], 1 }
 0x1af   :  { %745 = vsyncpa [#allocation6 + $0x1], 1 }
 0x1b0   :  { %746 = vsyncpa [#allocation4], 1 }
 0x1b1   :  { %748 = vsyncpa [#allocation4 + $0x1], 1 }

</bundles_post_ra>
